<compile_context>
chip_gen: v6e
topology: v6e:2x2x1
jax: 0.10.0
libtpu: 0.0.40
codegen_flags: <defaults>
</compile_context>

<pallas_src>
import jax
import jax.numpy as jnp
import numpy as np
from jax import lax
from jax.experimental import pallas as pl
from jax.experimental.pallas import tpu as pltpu


def _round_up(x, m):
    return (x + m - 1) // m * m


def _pad(x, shape, dtype):
    x = x.astype(dtype)
    if x.shape == tuple(shape):
        return x
    return jnp.pad(x, [(0, t - s) for s, t in zip(x.shape, shape)])


def _vmem_capacity_bytes():
    try:
        return int(pltpu.get_tpu_info().vmem_capacity_bytes)
    except Exception:
        return 64 * 1024 * 1024   # conservative fallback: v7x per-TensorCore VMEM


def gat_dagnn_kernel(logit_ref, adj_ref, sm_ref, v_ref, w0_ref, w1_ref,
                     attn_ref, out_ref):
    # logit_ref / adj_ref / sm_ref : (TB, Np) f32
    # v_ref                        : (TB, Np, D) kv_dtype
    # w0_ref / w1_ref              : (D, D) kv_dtype  (= Wr*.weight.T)
    # attn_ref                     : (TB, Np) f32      out_ref : (TB, D) f32
    f32 = jnp.float32
    TB, Np, D = v_ref.shape

    # ---- mask_logic + softmax over N (f32, VPU/EUP) --------------------------
    alpha = logit_ref[...] - (1.0 - adj_ref[...]) * 1e30
    m = jnp.max(alpha, axis=-1, keepdims=True)
    e = jnp.exp(alpha - m)
    # approx reciprocal (EUP slot): rows sum to 1 only to ~1e-3 relative.
    attn = e * pl.reciprocal(jnp.sum(e, axis=-1, keepdims=True), approx=True)
    attn_ref[...] = attn.astype(attn_ref.dtype)

    # ---- contract attn with V BEFORE the batch-invariant Wr weights ----------
    # attn @ (V W0^T s + V W1^T (1-s)) == ((attn*s)@V) W0^T + ((attn*(1-s))@V) W1^T
    # Chunked over N so live f32 temporaries are (TB, NC, D), not (TB, Np, D);
    # each loaded V chunk feeds BOTH accumulations (one vld, two FMAs).
    NC = 128
    n_full = Np // NC
    rem = Np - n_full * NC

    def chunk(off, size):
        v_c = v_ref[:, pl.ds(off, size), :].astype(f32)      # (TB, size, D)
        at_c = attn_ref[:, pl.ds(off, size)]                 # (TB, size)
        ws = at_c * sm_ref[:, pl.ds(off, size)]              # routed via Wr0
        wn = at_c - ws                                       # routed via Wr1
        return (jnp.sum(ws[:, :, None] * v_c, axis=1),       # (TB, D)
                jnp.sum(wn[:, :, None] * v_c, axis=1))       # (TB, D)

    a0 = jnp.zeros((TB, D), f32)
    a1 = jnp.zeros((TB, D), f32)
    if 0 < n_full <= 8:                     # few chunks: static offsets, unrolled
        for c in range(n_full):
            d0, d1 = chunk(c * NC, NC)
            a0 += d0
            a1 += d1
    elif n_full > 8:                        # huge N: rolled loop, aligned dyn offsets
        def body(c, carry):
            acc0, acc1 = carry
            d0, d1 = chunk(pl.multiple_of(c * NC, NC), NC)
            return acc0 + d0, acc1 + d1
        a0, a1 = lax.fori_loop(0, n_full, body, (a0, a1))
    if rem:                                 # static tail (Np is a multiple of 8)
        d0, d1 = chunk(n_full * NC, rem)
        a0 += d0
        a1 += d1

    # ---- tiny MXU matmuls against the shared (D, D) weights ------------------
    out = (jnp.dot(a0.astype(w0_ref.dtype), w0_ref[...], preferred_element_type=f32)
           + jnp.dot(a1.astype(w1_ref.dtype), w1_ref[...], preferred_element_type=f32))
    out_ref[...] = out.astype(out_ref.dtype)


def _pick_batch_tile(B, Np, D, kv_itemsize, budget_bytes):
    """Largest batch tile (multiple of 8, <= 256) whose per-step VMEM footprint
    (double-buffered tiles + weight buffers + live f32 temporaries) fits the
    budget, then capped so the batch grid has >= 2 steps (v7x 2-TC sharding)."""
    B8 = _round_up(B, 8)
    NC = min(Np, 128)
    weights = 2 * 2 * D * D * kv_itemsize            # Wr0^T / Wr1^T, double-buffered

    def footprint(tb):
        v_tiles = 2 * tb * Np * D * kv_itemsize      # V block, double-buffered
        small = (3 + 1) * 2 * tb * Np * 4            # logit/adj/s_mask in + attn out
        out_t = 2 * tb * D * 4                       # attn_sum out
        temps = 4 * tb * Np * 4                      # alpha / exp / attn / ws live f32
        temps += 3 * tb * NC * D * 4                 # per-chunk V upcast + 2 products
        temps += 4 * tb * D * 4                      # a0 / a1 accumulators + matmul io
        return weights + v_tiles + small + out_t + temps

    tb = 8
    for cand in range(16, min(256, B8) + 1, 8):
        if footprint(cand) <= budget_bytes:
            tb = cand
        else:
            break
    # Ensure >= 2 grid steps when possible so "parallel" can use both v7x TCs.
    if tb >= B8 and B8 >= 16:
        tb = _round_up(B8 // 2, 8)
    return tb


def gat_dagnn_forward(Q, K, V, adj, s_mask, params, *, kv_dtype=jnp.bfloat16,
                      batch_tile=None):
    """Pallas implementation of GAT_dagnn.forward. Returns (attn_weight, attn_sum).

    kv_dtype=jnp.bfloat16 (default) halves HBM traffic for the V / Wr streams;
    mask/softmax math stays f32.  Pass kv_dtype=jnp.float32 for exact-ish results.
    batch_tile, if given, must be a multiple of 8.
    """
    B, N, D = K.shape
    f32 = jnp.float32
    Np = _round_up(N, 8)          # sublane granularity only; no 128-pad of N or D

    # --- attention logit Linear(cat(Q, K)) hoisted to a tiny XLA matvec ---------
    # (K is only ever dotted with one vector; keeping it out of the kernel removes
    #  the entire K HBM stream + its double buffer.)
    w = params["linear_w"].astype(f32).reshape(2 * D)
    bias = params["linear_b"].astype(f32).reshape(())
    logit = ((Q.astype(f32) @ w[:D])[:, None]
             + jnp.einsum('bnd,d->bn', K.astype(f32), w[D:]) + bias)        # (B, N)

    # --- generation-aware VMEM budgeting / batch tiling --------------------------
    vmem_cap = _vmem_capacity_bytes()
    vmem_limit = int(min(vmem_cap * 5 // 8, 80 * 1024 * 1024))  # 40 MiB v7x, 80 MiB v5e/v6e
    kv_itemsize = jnp.dtype(kv_dtype).itemsize
    TB = batch_tile if batch_tile is not None else _pick_batch_tile(
        B, Np, D, kv_itemsize, budget_bytes=vmem_limit * 2 // 3)
    Bp = _round_up(B, TB)
    grid = (Bp // TB,)

    # --- pad batch to TB and N to a multiple of 8 (padded adj == 0 -> masked) ----
    logit2 = _pad(logit, (Bp, Np), f32)
    adj2 = _pad(adj, (Bp, Np), f32)
    sm2 = _pad(s_mask, (Bp, Np), f32)
    v3 = _pad(V, (Bp, Np, D), kv_dtype)
    w0t = params["Wr0_w"].T.astype(kv_dtype)      # (D, D): out = a0 @ Wr0^T + a1 @ Wr1^T
    w1t = params["Wr1_w"].T.astype(kv_dtype)

    attn, out = pl.pallas_call(
        gat_dagnn_kernel,
        out_shape=(jax.ShapeDtypeStruct((Bp, Np), f32),
                   jax.ShapeDtypeStruct((Bp, D), f32)),
        grid_spec=pltpu.PrefetchScalarGridSpec(
            num_scalar_prefetch=0,
            grid=grid,
            in_specs=[
                pl.BlockSpec((TB, Np), lambda b: (b, 0)),         # logits
                pl.BlockSpec((TB, Np), lambda b: (b, 0)),         # adj
                pl.BlockSpec((TB, Np), lambda b: (b, 0)),         # s_mask
                pl.BlockSpec((TB, Np, D), lambda b: (b, 0, 0)),   # V  (kv_dtype)
                pl.BlockSpec((D, D), lambda b: (0, 0)),           # Wr0^T (batch-invariant)
                pl.BlockSpec((D, D), lambda b: (0, 0)),           # Wr1^T (batch-invariant)
            ],
            out_specs=[
                pl.BlockSpec((TB, Np), lambda b: (b, 0)),         # attn_weight
                pl.BlockSpec((TB, D), lambda b: (b, 0)),          # attn_sum
            ]),
        compiler_params=pltpu.CompilerParams(
            dimension_semantics=("parallel",),     # shard batch tiles across v7x's 2 TCs
            vmem_limit_bytes=vmem_limit),
    )(logit2, adj2, sm2, v3, w0t, w1t)

    attn_weight = attn[:B, :N].reshape(B, 1, N)
    attn_sum = out[:B, :]
    return attn_weight, attn_sum


def ref_forward(Q, K, V, adj, s_mask, params):
    """Pure-JAX reference mirroring the PyTorch module exactly (f32)."""
    B, N, D = K.shape
    Qe = jnp.broadcast_to(Q[:, None, :], (B, N, D))
    X = jnp.concatenate([Qe, K], axis=2)                              # (B, N, 2D)
    alpha = (X @ params["linear_w"].T + params["linear_b"])           # (B, N, 1)
    alpha = jnp.transpose(alpha, (0, 2, 1))                           # (B, 1, N)
    alpha = alpha - (1.0 - adj[:, None, :].astype(jnp.float32)) * 1e30
    attn = jax.nn.softmax(alpha, axis=2)
    V0 = V @ params["Wr0_w"].T
    V1 = V @ params["Wr1_w"].T
    smf = s_mask[:, :, None].astype(jnp.float32)
    Vm = V0 * smf + V1 * (1.0 - smf)
    attn_sum = jnp.einsum('bqn,bnd->bqd', attn, Vm)[:, 0, :]
    return attn, attn_sum


if __name__ == "__main__":
    B, N, D = 2, 8, 32  # hidden_size = D
    key = jax.random.PRNGKey(0)
    kq, kk, kv, ka, ks, kw1, kw2, kw3, kb = jax.random.split(key, 9)

    Q = jax.random.normal(kq, (B, D), dtype=jnp.float32)
    K = jax.random.normal(kk, (B, N, D), dtype=jnp.float32)
    V = jax.random.normal(kv, (B, N, D), dtype=jnp.float32)
    adj = (jax.random.uniform(ka, (B, N)) < 0.7).astype(jnp.float32)
    adj = adj.at[:, 0].set(1.0)   # at least one visible node per query
    s_mask = (jax.random.uniform(ks, (B, N)) < 0.5).astype(jnp.float32)

    # Deterministic synthetic parameters (shapes from GAT_dagnn.__init__).
    params = {
        "linear_w": jax.random.normal(kw1, (1, 2 * D), dtype=jnp.float32) * 0.1,
        "linear_b": jax.random.normal(kb, (1,), dtype=jnp.float32) * 0.1,
        "Wr0_w": jax.random.normal(kw2, (D, D), dtype=jnp.float32) * 0.1,
        "Wr1_w": jax.random.normal(kw3, (D, D), dtype=jnp.float32) * 0.1,
    }

    attn_ref_, sum_ref_ = ref_forward(Q, K, V, adj, s_mask, params)

    # f32 V/weights: tight check of the kernel algorithm.
    aw32, as32 = gat_dagnn_forward(Q, K, V, adj, s_mask, params, kv_dtype=jnp.float32)
    jax.block_until_ready((aw32, as32))
    np.testing.assert_allclose(np.asarray(aw32), np.asarray(attn_ref_), rtol=2e-3, atol=2e-3)
    np.testing.assert_allclose(np.asarray(as32), np.asarray(sum_ref_), rtol=2e-3, atol=2e-3)

    # Default bf16 V/weights (the fast, HBM-byte-halved path): looser attn_sum tol.
    awbf, asbf = gat_dagnn_forward(Q, K, V, adj, s_mask, params)
    jax.block_until_ready((awbf, asbf))
    np.testing.assert_allclose(np.asarray(awbf), np.asarray(attn_ref_), rtol=2e-3, atol=2e-3)
    np.testing.assert_allclose(np.asarray(asbf), np.asarray(sum_ref_), rtol=2e-2, atol=2e-2)

    print("KERNEL_OK")
</pallas_src>

<mosaic_0001>
module attributes {stable_mosaic.version = 11 : i64} {
  func.func @gat_dagnn_kernel(%arg0: i32, %arg1: memref<8x8xf32, #tpu.memory_space<vmem>>, %arg2: memref<8x8xf32, #tpu.memory_space<vmem>>, %arg3: memref<8x8xf32, #tpu.memory_space<vmem>>, %arg4: memref<8x8x32xf32, #tpu.memory_space<vmem>>, %arg5: memref<32x32xf32, #tpu.memory_space<vmem>>, %arg6: memref<32x32xf32, #tpu.memory_space<vmem>>, %arg7: memref<8x8xf32, #tpu.memory_space<vmem>>, %arg8: memref<8x32xf32, #tpu.memory_space<vmem>>) attributes {dimension_semantics = [#tpu.dimension_semantics<parallel>], iteration_bounds = array<i64: 1>, scalar_prefetch = 0 : i64, scratch_operands = 0 : i64, tpu.core_type = #tpu.core_type<tc>, window_params = [{transform_indices = @transform_0, window_bounds = array<i64: 8, 8>}, {transform_indices = @transform_1, window_bounds = array<i64: 8, 8>}, {transform_indices = @transform_2, window_bounds = array<i64: 8, 8>}, {transform_indices = @transform_3, window_bounds = array<i64: 8, 8, 32>}, {pipeline_mode = #tpu.pipeline_mode<synchronous>, transform_indices = @transform_4, window_bounds = array<i64: 32, 32>}, {pipeline_mode = #tpu.pipeline_mode<synchronous>, transform_indices = @transform_5, window_bounds = array<i64: 32, 32>}, {transform_indices = @transform_6, window_bounds = array<i64: 8, 8>}, {transform_indices = @transform_7, window_bounds = array<i64: 8, 32>}]} {
    %c0 = arith.constant 0 : index
    %c0_0 = arith.constant 0 : index
    %0 = vector.load %arg1[%c0, %c0_0] : memref<8x8xf32, #tpu.memory_space<vmem>>, vector<8x8xf32>
    %c0_1 = arith.constant 0 : index
    %c0_2 = arith.constant 0 : index
    %1 = vector.load %arg2[%c0_1, %c0_2] : memref<8x8xf32, #tpu.memory_space<vmem>>, vector<8x8xf32>
    %cst = arith.constant 1.000000e+00 : f32
    %2 = vector.broadcast %cst : f32 to vector<8x8xf32>
    %3 = arith.subf %2, %1 : vector<8x8xf32>
    %cst_3 = arith.constant 1.000000e+30 : f32
    %4 = vector.broadcast %cst_3 : f32 to vector<8x8xf32>
    %5 = arith.mulf %3, %4 : vector<8x8xf32>
    %6 = arith.subf %0, %5 : vector<8x8xf32>
    %cst_4 = arith.constant dense<0xFF800000> : vector<8xf32>
    %7 = vector.multi_reduction <maximumf>, %6, %cst_4 [1] : vector<8x8xf32> to vector<8xf32>
    %8 = vector.shape_cast %7 : vector<8xf32> to vector<8x1xf32>
    %9 = vector.broadcast %8 : vector<8x1xf32> to vector<8x8xf32>
    %10 = arith.subf %6, %9 : vector<8x8xf32>
    %11 = math.exp %10 : vector<8x8xf32>
    %cst_5 = arith.constant dense<0.000000e+00> : vector<8xf32>
    %12 = vector.multi_reduction <add>, %11, %cst_5 [1] : vector<8x8xf32> to vector<8xf32>
    %13 = vector.shape_cast %12 : vector<8xf32> to vector<8x1xf32>
    %14 = tpu.reciprocal %13 {approx = true} : vector<8x1xf32> -> vector<8x1xf32>
    %15 = vector.broadcast %14 : vector<8x1xf32> to vector<8x8xf32>
    %16 = arith.mulf %11, %15 : vector<8x8xf32>
    %c0_6 = arith.constant 0 : index
    %c0_7 = arith.constant 0 : index
    %17 = vector.load %arg7[%c0_6, %c0_7] : memref<8x8xf32, #tpu.memory_space<vmem>>, vector<8x8xf32>
    tpu.vector_store %arg7[%c0_6, %c0_7], %16 {strides = array<i32>} : memref<8x8xf32, #tpu.memory_space<vmem>>, vector<8x8xf32>,
    %cst_8 = arith.constant 0.000000e+00 : f32
    %18 = vector.broadcast %cst_8 : f32 to vector<8x32xf32>
    %cst_9 = arith.constant 0.000000e+00 : f32
    %19 = vector.broadcast %cst_9 : f32 to vector<8x32xf32>
    %c0_10 = arith.constant 0 : index
    %c0_11 = arith.constant 0 : index
    %c0_12 = arith.constant 0 : index
    %20 = vector.load %arg4[%c0_10, %c0_11, %c0_12] : memref<8x8x32xf32, #tpu.memory_space<vmem>>, vector<8x8x32xf32>
    %c0_13 = arith.constant 0 : index
    %c0_14 = arith.constant 0 : index
    %21 = vector.load %arg7[%c0_13, %c0_14] : memref<8x8xf32, #tpu.memory_space<vmem>>, vector<8x8xf32>
    %c0_15 = arith.constant 0 : index
    %c0_16 = arith.constant 0 : index
    %22 = vector.load %arg3[%c0_15, %c0_16] : memref<8x8xf32, #tpu.memory_space<vmem>>, vector<8x8xf32>
    %23 = arith.mulf %21, %22 : vector<8x8xf32>
    %24 = arith.subf %21, %23 : vector<8x8xf32>
    %25 = vector.shape_cast %23 : vector<8x8xf32> to vector<8x8x1xf32>
    %26 = vector.broadcast %25 : vector<8x8x1xf32> to vector<8x8x32xf32>
    %27 = arith.mulf %26, %20 : vector<8x8x32xf32>
    %cst_17 = arith.constant dense<0.000000e+00> : vector<8x32xf32>
    %28 = vector.multi_reduction <add>, %27, %cst_17 [1] : vector<8x8x32xf32> to vector<8x32xf32>
    %29 = vector.shape_cast %24 : vector<8x8xf32> to vector<8x8x1xf32>
    %30 = vector.broadcast %29 : vector<8x8x1xf32> to vector<8x8x32xf32>
    %31 = arith.mulf %30, %20 : vector<8x8x32xf32>
    %cst_18 = arith.constant dense<0.000000e+00> : vector<8x32xf32>
    %32 = vector.multi_reduction <add>, %31, %cst_18 [1] : vector<8x8x32xf32> to vector<8x32xf32>
    %33 = arith.addf %18, %28 : vector<8x32xf32>
    %34 = arith.addf %19, %32 : vector<8x32xf32>
    %c0_19 = arith.constant 0 : index
    %c0_20 = arith.constant 0 : index
    %35 = vector.load %arg5[%c0_19, %c0_20] : memref<32x32xf32, #tpu.memory_space<vmem>>, vector<32x32xf32>
    %cst_21 = arith.constant dense<0.000000e+00> : vector<8x32xf32>
    %36 = tpu.matmul %33, %35, %cst_21 {dimension_numbers = #tpu.dot_dimension_numbers<[1], [0], [0], [1], [0, 0, 1, 1], [], []>} : vector<8x32xf32>, vector<32x32xf32>, vector<8x32xf32> -> vector<8x32xf32>
    %c0_22 = arith.constant 0 : index
    %c0_23 = arith.constant 0 : index
    %37 = vector.load %arg6[%c0_22, %c0_23] : memref<32x32xf32, #tpu.memory_space<vmem>>, vector<32x32xf32>
    %cst_24 = arith.constant dense<0.000000e+00> : vector<8x32xf32>
    %38 = tpu.matmul %34, %37, %cst_24 {dimension_numbers = #tpu.dot_dimension_numbers<[1], [0], [0], [1], [0, 0, 1, 1], [], []>} : vector<8x32xf32>, vector<32x32xf32>, vector<8x32xf32> -> vector<8x32xf32>
    %39 = arith.addf %36, %38 : vector<8x32xf32>
    %c0_25 = arith.constant 0 : index
    %c0_26 = arith.constant 0 : index
    %40 = vector.load %arg8[%c0_25, %c0_26] : memref<8x32xf32, #tpu.memory_space<vmem>>, vector<8x32xf32>
    tpu.vector_store %arg8[%c0_25, %c0_26], %39 {strides = array<i32>} : memref<8x32xf32, #tpu.memory_space<vmem>>, vector<8x32xf32>,
    return
  }
  func.func @transform_0(%arg0: i32) -> (i32, i32) {
    %c0_i32 = arith.constant 0 : i32
    %c0_i32_0 = arith.constant 0 : i32
    return %arg0, %c0_i32 : i32, i32
  }
  func.func @transform_1(%arg0: i32) -> (i32, i32) {
    %c0_i32 = arith.constant 0 : i32
    %c0_i32_0 = arith.constant 0 : i32
    return %arg0, %c0_i32 : i32, i32
  }
  func.func @transform_2(%arg0: i32) -> (i32, i32) {
    %c0_i32 = arith.constant 0 : i32
    %c0_i32_0 = arith.constant 0 : i32
    return %arg0, %c0_i32 : i32, i32
  }
  func.func @transform_3(%arg0: i32) -> (i32, i32, i32) {
    %c0_i32 = arith.constant 0 : i32
    %c0_i32_0 = arith.constant 0 : i32
    %c0_i32_1 = arith.constant 0 : i32
    return %arg0, %c0_i32, %c0_i32_0 : i32, i32, i32
  }
  func.func @transform_4(%arg0: i32) -> (i32, i32) {
    %c0_i32 = arith.constant 0 : i32
    %c0_i32_0 = arith.constant 0 : i32
    %c0_i32_1 = arith.constant 0 : i32
    return %c0_i32, %c0_i32_0 : i32, i32
  }
  func.func @transform_5(%arg0: i32) -> (i32, i32) {
    %c0_i32 = arith.constant 0 : i32
    %c0_i32_0 = arith.constant 0 : i32
    %c0_i32_1 = arith.constant 0 : i32
    return %c0_i32, %c0_i32_0 : i32, i32
  }
  func.func @transform_6(%arg0: i32) -> (i32, i32) {
    %c0_i32 = arith.constant 0 : i32
    %c0_i32_0 = arith.constant 0 : i32
    return %arg0, %c0_i32 : i32, i32
  }
  func.func @transform_7(%arg0: i32) -> (i32, i32) {
    %c0_i32 = arith.constant 0 : i32
    %c0_i32_0 = arith.constant 0 : i32
    return %arg0, %c0_i32 : i32, i32
  }
}

</mosaic_0001>

<bundles_post_ra>
// kernel: tpu_custom_call.1
= control target key start
LH: loop header
LB: loop body
LE: loop exit
PB: predicated region body
PF: predicated region fallthrough
CT: control target
= control target key end

     0   :  { %13 = vsyncpa [#allocation3], 0  ;;  %s967_s0 = inlined_call_operand.hbm [shape: f32[8,8], index: 0, kind: input, shape index: {}]   ;;  %s968_s1 = inlined_call_operand.hbm [shape: f32[8,8], index: 1, kind: input, shape index: {}]   ;;  %s969_s2 = inlined_call_operand.hbm [shape: f32[8,8], index: 2, kind: input, shape index: {}]   ;;  %s970_s3 = inlined_call_operand.hbm [shape: f32[8,8,32], index: 3, kind: input, shape index: {}]   ;;  %s971_s4 = inlined_call_operand.hbm [shape: f32[32,32], index: 4, kind: input, shape index: {}]   ;;  %s972_s5 = inlined_call_operand.hbm [shape: f32[32,32], index: 5, kind: input, shape index: {}]   ;;  %s973_s6 = inlined_call_operand.hbm [shape: f32[8,8], index: 6, kind: output, shape index: {0}]   ;;  %s974_s7 = inlined_call_operand.hbm [shape: f32[8,32], index: 7, kind: output, shape index: {1}]  }
   0x1   :  { %14 = vsyncpa [#allocation6], 0 }
   0x2   :  { %15 = vsyncpa [#allocation9], 0 }
   0x3   :  { %16 = vsyncpa [#allocation12], 0 }
   0x4   :  { %17 = vsyncpa [#allocation4], 0 }
   0x5   :  { %18 = vsyncpa [#allocation15], 0  ;;  %s834_s24 = smov [#allocation5]   ;;  %s835_s26 = smov [#allocation8]  }
   0x6   :  { %s35_s25 = sshll.u32 %s834_s24, 4  ;;  %s54_s27 = sshll.u32 %s835_s26, 4  ;;  %s36_s25 = int_to_ptr.vmem [resolvable:$true] %s35_s25  ;;  %s55_s27 = int_to_ptr.vmem [resolvable:$true] %s54_s27 }
   0x7   :  { %s670_s28 = scalar_lea.vmem %s36_s25, 128  ;;  %p675_p1 = scmp.lt.s32.totalorder %s36_s25, %s36_s25 }
   0x8   :  { %p671_p0 = scmp.ne.s32.totalorder %s36_s25, %s670_s28  ;;  %p676_p2 = scmp.lt.s32.totalorder %s670_s28, %s670_s28 }
   0xa   :  { %p677_p3 = por %p676_p2, %p675_p1 }
   0xc   :  { %p678_p4 = pnand %p677_p3, %p671_p0 }
   0xe   :  { %681 = shalt.err (!%p678_p4)
}
   0xf   :  { %38 = dma.hbm_to_vmem [thread:$0]  %s968_s1, 128, %s36_s25, [#allocation6]  }
  0x10   :  { %s690_s8 = scalar_lea.vmem %s55_s27, 1024  ;;  %p695_p6 = scmp.lt.s32.totalorder %s55_s27, %s55_s27 }
  0x11   :  { %p691_p5 = scmp.ne.s32.totalorder %s55_s27, %s690_s8  ;;  %p696_p7 = scmp.lt.s32.totalorder %s690_s8, %s690_s8 }
  0x13   :  { %p697_p8 = por %p696_p7, %p695_p6 }
  0x15   :  { %p698_p9 = pnand %p697_p8, %p691_p5 }
  0x17   :  { %701 = shalt.err (!%p698_p9)
}
  0x18   :  { %s836_s9 = smov 128   ;;  %s837_s10 = smov 8  }
  0x19   :  { %60 = dma.hbm_to_vmem [thread:$0]  %s970_s3, 1024, %s55_s27, [#allocation9], %s836_s9, %s836_s9, %s837_s10  }
  0x1a   :  { %s838_s13 = smov [#allocation2]   ;;  %s839_s15 = smov [#allocation7]  }
  0x1b   :  { %s25_s14 = sshll.u32 %s838_s13, 4  ;;  %s45_s1 = sshll.u32 %s839_s15, 4  ;;  %s26_s14 = int_to_ptr.vmem [resolvable:$true] %s25_s14  ;;  %s46_s1 = int_to_ptr.vmem [resolvable:$true] %s45_s1 }
  0x1c   :  { %s710_s16 = scalar_lea.vmem %s26_s14, 128  ;;  %p715_p11 = scmp.lt.s32.totalorder %s26_s14, %s26_s14 }
  0x1d   :  { %p711_p10 = scmp.ne.s32.totalorder %s26_s14, %s710_s16  ;;  %p716_p12 = scmp.lt.s32.totalorder %s710_s16, %s710_s16 }
  0x1f   :  { %p717_p13 = por %p716_p12, %p715_p11 }
  0x21   :  { %p718_p0 = pnand %p717_p13, %p711_p10 }
  0x23   :  { %721 = shalt.err (!%p718_p0)
}
  0x24   :  { %28 = dma.hbm_to_vmem [thread:$0]  %s967_s0, 128, %s26_s14, [#allocation3]  }
  0x25   :  { %s730_s19 = scalar_lea.vmem %s46_s1, 128  ;;  %p735_p2 = scmp.lt.s32.totalorder %s46_s1, %s46_s1 }
  0x26   :  { %p731_p1 = scmp.ne.s32.totalorder %s46_s1, %s730_s19  ;;  %p736_p3 = scmp.lt.s32.totalorder %s730_s19, %s730_s19 }
  0x28   :  { %p737_p4 = por %p736_p3, %p735_p2 }
  0x2a   :  { %p738_p5 = pnand %p737_p4, %p731_p1 }
  0x2c   :  { %741 = shalt.err (!%p738_p5)
}
  0x2d   :  { %48 = dma.hbm_to_vmem [thread:$0]  %s969_s2, 128, %s46_s1, [#allocation6]  }
  0x2e   :  { %s840_s21 = smov [#allocation10]   ;;  %s841_s23 = smov [#allocation11]  }
  0x2f   :  { %s66_s22 = sshll.u32 %s840_s21, 4  ;;  %s78_s24 = sshll.u32 %s841_s23, 4  ;;  %s67_s22 = int_to_ptr.vmem [resolvable:$true] %s66_s22  ;;  %s79_s24 = int_to_ptr.vmem [resolvable:$true] %s78_s24 }
  0x30   :  { %s750_s25 = scalar_lea.vmem %s67_s22, 512  ;;  %p755_p7 = scmp.lt.s32.totalorder %s67_s22, %s67_s22 }
  0x31   :  { %p751_p6 = scmp.ne.s32.totalorder %s67_s22, %s750_s25  ;;  %p756_p8 = scmp.lt.s32.totalorder %s750_s25, %s750_s25 }
  0x33   :  { %p757_p9 = por %p756_p8, %p755_p7 }
  0x35   :  { %p758_p10 = pnand %p757_p9, %p751_p6 }
  0x37   :  { %761 = shalt.err (!%p758_p10)
}
  0x38   :  { %72 = dma.hbm_to_vmem [thread:$0]  %s971_s4, 512, %s67_s22, [#allocation9], %s836_s9, %s836_s9, %s837_s10  }
  0x39   :  { %s770_s2 = scalar_lea.vmem %s79_s24, 512  ;;  %p775_p12 = scmp.lt.s32.totalorder %s79_s24, %s79_s24 }
  0x3a   :  { %p771_p11 = scmp.ne.s32.totalorder %s79_s24, %s770_s2  ;;  %p776_p13 = scmp.lt.s32.totalorder %s770_s2, %s770_s2 }
  0x3c   :  { %p777_p0 = por %p776_p13, %p775_p12 }
  0x3e   :  { %p778_p1 = pnand %p777_p0, %p771_p11 }
  0x40   :  { %781 = shalt.err (!%p778_p1)
}
  0x41   :  { %84 = dma.hbm_to_vmem [thread:$0]  %s972_s5, 512, %s79_s24, [#allocation12], %s836_s9, %s836_s9, %s837_s10  }
  0x42   :  { %822 = dma.done.wait [#allocation3], 128  }
  0x43   :  { %823 = vsyncadd [#allocation3], 4294967168 }
  0x44   :  { %824 = dma.done.wait [#allocation6], 256  }
  0x45   :  { %825 = vsyncadd [#allocation6], 4294967040 }
  0x46   :  { %826 = dma.done.wait [#allocation9], 1536  }
  0x47   :  { %827 = vsyncadd [#allocation9], 4294965760 }
  0x48   :  { %828 = dma.done.wait [#allocation12], 512  }
  0x49   :  { %829 = vsyncadd [#allocation12], 4294966784  ;;  %v104_v0 = vld [vmem:[#allocation5] sm:$0xff]  ;;  %v103_v2 = vld [vmem:[#allocation2] sm:$0xff]  ;;  %vm108_vm0 = vcmask 64512   ;;  %v133_v14 = vlaneseq  ;;  %v842_v44 = vmov 0.0  }
  0x4a   :  { %v105_v1 = vsub.f32 1.0, %v104_v0  ;;  %v130_v16 = vld [vmem:[#allocation7] sm:$0xff]  ;;  %624 = vmatprep.subr.mxu0 %v842_v44  ;;  %635 = vmatprep.subr.mxu1 %v842_v44  ;;  %v396_v47 = vld [vmem:[#allocation11 + $0x10] sm:$0xff]  ;;  %v395_v49 = vld [vmem:[#allocation11 + $0x8] sm:$0xff]  ;;  %vm843_vm1 = vmmov 0   ;;  %vm197_vm2 = vcmask 261120  }
  0x4b   :  { %v134_v15 = vshrl.u32 %v133_v14, 7  ;;  %v397_v45 = vld [vmem:[#allocation11 + $0x18] sm:$0xff]  ;;  %v392_v48 = vld [vmem:[#allocation10 + $0x10] sm:$0xff]  ;;  %v391_v50 = vld [vmem:[#allocation10 + $0x8] sm:$0xff]  ;;  %632 = vmatprep.mubr.msk.f32.mxu0 %vm843_vm1, %v842_v44  ;;  %643 = vmatprep.mubr.msk.f32.mxu1 %vm843_vm1, %v842_v44  ;;  %vm406_vm3 = vcmask 1041409   ;;  %vm408_vm4 = vcmask 1042434  }
  0x4c   :  { %v106_v3 = vmul.f32 1e+30, %v105_v1  ;;  %v393_v46 = vld [vmem:[#allocation10 + $0x18] sm:$0xff]  ;;  %625 = vmatpush3.msra.mxu0 %v397_v45  ;;  %v394_v51 = vld [vmem:[#allocation11] sm:$0xff]  ;;  %v122_v63 = vld [vmem:[#allocation8 + $0x8] sm:$0xff]  ;;  %vm410_vm5 = vcmask 1043459  }
  0x4d   :  { %v135_v17 = vsub.s32 0, %v134_v15  ;;  %v142_v22 = vsub.s32 1, %v134_v15  ;;  %v163_v25 = vsub.s32 4, %v134_v15  ;;  %v149_v26 = vsub.s32 2, %v134_v15  ;;  %636 = vmatpush3.msra.mxu1 %v393_v46  ;;  %626 = vmatprep.subr.mxu0 %v842_v44  ;;  %v390_v52 = vld [vmem:[#allocation10] sm:$0xff]  ;;  %s844_s4 = smov [#allocation13]  }
  0x4e   :  { %v107_v4 = vsub.f32 %v103_v2, %v106_v3  ;;  %v170_v29 = vsub.s32 5, %v134_v15  ;;  %v156_v30 = vsub.s32 3, %v134_v15  ;;  %v177_v33 = vsub.s32 6, %v134_v15  ;;  %637 = vmatprep.subr.mxu1 %v842_v44  ;;  %627 = vmatpush3.msra.mxu0 %v396_v47  ;;  %v121_v54 = vld [vmem:[#allocation8] sm:$0xff]  ;;  %s586_s5 = sshll.u32 %s844_s4, 4  ;;  %s587_s5 = int_to_ptr.vmem [resolvable:$true] %s586_s5 }
  0x4f   :  { %v184_v36 = vsub.s32 7, %v134_v15  ;;  %638 = vmatpush3.msra.mxu1 %v392_v48  ;;  %628 = vmatprep.subr.mxu0 %v842_v44  ;;  %vm412_vm6 = vcmask 1044484   ;;  %vm414_vm7 = vcmask 1045509   ;;  %vm416_vm8 = vcmask 1046534   ;;  %s782_s29 = scalar_lea.vmem %s587_s5, 128  ;;  %p787_p3 = scmp.lt.s32.totalorder %s587_s5, %s587_s5 }
  0x50   :  { %v109_v5 = vsel %vm108_vm0, %v107_v4, -inf  ;;  %639 = vmatprep.subr.mxu1 %v842_v44  ;;  %629 = vmatpush3.msra.mxu0 %v395_v49  ;;  %vm418_vm9 = vcmask 1047559   ;;  %p783_p2 = scmp.ne.s32.totalorder %s587_s5, %s782_s29  ;;  %p788_p4 = scmp.lt.s32.totalorder %s782_s29, %s782_s29 }
  0x51   :  { %110 = vmax.xlane.f32.xlu0 %v109_v5  ;;  %640 = vmatpush3.msra.mxu1 %v391_v50  ;;  %v125_v5 = vld [vmem:[#allocation8 + $0x20] sm:$0xff] }
  0x52   :  { %630 = vmatprep.subr.mxu0 %v842_v44  ;;  %641 = vmatprep.subr.mxu1 %v842_v44  ;;  %p789_p5 = por %p788_p4, %p787_p3 }
  0x53   :  { %631 = vmatpush3.msra.mxu0 %v394_v51  ;;  %642 = vmatpush3.msra.mxu1 %v390_v52 }
  0x54   :  { %p790_p6 = pnand %p789_p5, %p783_p2 }
  0xda   :  { %v111_v6 = vpop.xlane.xlu0 %110 }
  0xdb   :  { %v112_v7 = vsub.f32 %v107_v4, %v111_v6 }
  0xdd   :  { %v113_v8 = vmul.f32 1.442695, %v112_v7 }
  0xdf   :  { %658 = vpow2.f32 %v113_v8  ;;  %v123_v8 = vld [vmem:[#allocation8 + $0x10] sm:$0xff] }
  0xec   :  { %v659_v9 = vpop.eup %658 }
  0xed   :  { %v115_v10 = vsel %vm108_vm0, %v659_v9, 0.0 }
  0xee   :  { %116 = vadd.xlane.f32.xlu0 %v115_v10 }
 0x177   :  { %v117_v11 = vpop.xlane.xlu0 %116 }
 0x178   :  { %660 = vrcp.f32 %v117_v11 }
 0x185   :  { %v661_v12 = vpop.eup %660 }
 0x186   :  { %v119_v13 = vmul.f32 %v661_v12, %v659_v9  ;;  %v919_v12 = vld [vmem:[#allocation8 + $0x18] sm:$0xff] }
 0x188   :  { %120 = vst.msk [vmem:[#allocation13] sm:$0xff] %vm108_vm0, %v119_v13 }
 0x18f   :  { %v129_v18 = vld [vmem:[#allocation13] sm:$0xff] }
 0x190   :  { %v131_v19 = vmul.f32 %v130_v16, %v129_v18 }
 0x192   :  { %v136_v20 = vrot.slane %v131_v19, %v135_v17  ;;  %v132_v21 = vsub.f32 %v129_v18, %v131_v19  ;;  %v143_v24 = vrot.slane %v131_v19, %v142_v22  ;;  %v150_v28 = vrot.slane %v131_v19, %v149_v26  ;;  %v126_v18 = vld [vmem:[#allocation8 + $0x28] sm:$0xff] }
 0x193   :  { %v157_v32 = vrot.slane %v131_v19, %v156_v30  ;;  %v164_v35 = vrot.slane %v131_v19, %v163_v25  ;;  %v171_v38 = vrot.slane %v131_v19, %v170_v29  ;;  %v178_v39 = vrot.slane %v131_v19, %v177_v33 }
 0x194   :  { %138 = vbcast.lane.b32.xlu1 %v136_v20, 256  ;;  %v257_v23 = vrot.slane %v132_v21, %v135_v17  ;;  %v285_v27 = vrot.slane %v132_v21, %v163_v25  ;;  %v292_v31 = vrot.slane %v132_v21, %v170_v29  ;;  %v299_v34 = vrot.slane %v132_v21, %v177_v33 }
 0x195   :  { %v306_v37 = vrot.slane %v132_v21, %v184_v36  ;;  %v264_v40 = vrot.slane %v132_v21, %v142_v22  ;;  %v271_v41 = vrot.slane %v132_v21, %v149_v26  ;;  %v278_v42 = vrot.slane %v132_v21, %v156_v30 }
 0x196   :  { %259 = vbcast.lane.b32.xlu0 %v257_v23, 256  ;;  %v185_v43 = vrot.slane %v131_v19, %v184_v36  ;;  %v127_v23 = vld [vmem:[#allocation8 + $0x30] sm:$0xff] }
 0x198   :  { %145 = vbcast.lane.b32.xlu1 %v143_v24, 256  ;;  %v923_v24 = vld [vmem:[#allocation8 + $0x38] sm:$0xff] }
 0x19a   :  { %287 = vbcast.lane.b32.xlu0 %v285_v27, 256 }
 0x19c   :  { %152 = vbcast.lane.b32.xlu1 %v150_v28, 256 }
 0x19e   :  { %294 = vbcast.lane.b32.xlu0 %v292_v31, 256 }
 0x1a0   :  { %159 = vbcast.lane.b32.xlu1 %v157_v32, 256 }
 0x1a2   :  { %301 = vbcast.lane.b32.xlu0 %v299_v34, 256 }
 0x1a4   :  { %166 = vbcast.lane.b32.xlu1 %v164_v35, 256 }
 0x1a6   :  { %308 = vbcast.lane.b32.xlu0 %v306_v37, 256 }
 0x1a8   :  { %173 = vbcast.lane.b32.xlu1 %v171_v38, 256 }
 0x1ac   :  { %180 = vbcast.lane.b32.xlu1 %v178_v39, 256 }
 0x1b0   :  { %266 = vbcast.lane.b32.xlu1 %v264_v40, 256 }
 0x1b4   :  { %273 = vbcast.lane.b32.xlu1 %v271_v41, 256 }
 0x1b8   :  { %280 = vbcast.lane.b32.xlu1 %v278_v42, 256 }
 0x1bc   :  { %187 = vbcast.lane.b32.xlu1 %v185_v43, 256 }
 0x206   :  { %v139_v53 = vpop.permute.xlu1 %138 }
 0x207   :  { %v189_v56 = vmul.f32 %v139_v53, %v121_v54 }
 0x208   :  { %v260_v55 = vpop.permute.xlu0 %259 }
 0x209   :  { %v198_v59 = vsel %vm197_vm2, %v189_v56, 0.0  ;;  %v310_v61 = vmul.f32 %v260_v55, %v121_v54 }
 0x20a   :  { %v146_v57 = vpop.permute.xlu1 %145  ;;  %v199_v62 = vrot.slane %v198_v59, 4 }
 0x20b   :  { %v318_v2 = vsel %vm197_vm2, %v310_v61, 0.0  ;;  %v190_v3 = vmul.f32 %v146_v57, %v122_v63 }
 0x20c   :  { %v288_v58 = vpop.permute.xlu0 %287  ;;  %v200_v4 = vadd.f32 %v199_v62, %v198_v59  ;;  %v319_v6 = vrot.slane %v318_v2, 4 }
 0x20d   :  { %v205_v10 = vsel %vm197_vm2, %v190_v3, 0.0  ;;  %v314_v11 = vmul.f32 %v288_v58, %v125_v5 }
 0x20e   :  { %v153_v60 = vpop.permute.xlu1 %152  ;;  %v201_v13 = vrot.slane %v200_v4, 2  ;;  %v320_v14 = vadd.f32 %v319_v6, %v318_v2  ;;  %v206_v17 = vrot.slane %v205_v10, 4 }
 0x20f   :  { %v191_v15 = vmul.f32 %v153_v60, %v123_v8  ;;  %v346_v20 = vsel %vm197_vm2, %v314_v11, 0.0 }
 0x210   :  { %v295_v0 = vpop.permute.xlu0 %294  ;;  %v202_v22 = vadd.f32 %v201_v13, %v200_v4  ;;  %v321_v27 = vrot.slane %v320_v14, 2  ;;  %v207_v31 = vadd.f32 %v206_v17, %v205_v10  ;;  %v347_v32 = vrot.slane %v346_v20, 4 }
 0x211   :  { %v212_v28 = vsel %vm197_vm2, %v191_v15, 0.0  ;;  %v315_v29 = vmul.f32 %v295_v0, %v126_v18 }
 0x212   :  { %v160_v1 = vpop.permute.xlu1 %159  ;;  %v203_v38 = vrot.slane %v202_v22, 1  ;;  %v213_v39 = vrot.slane %v212_v28, 4  ;;  %v322_v41 = vadd.f32 %v321_v27, %v320_v14  ;;  %v208_v46 = vrot.slane %v207_v31, 2 }
 0x213   :  { %v192_v19 = vmul.f32 %v160_v1, %v919_v12  ;;  %v353_v42 = vsel %vm197_vm2, %v315_v29, 0.0  ;;  %v348_v49 = vadd.f32 %v347_v32, %v346_v20 }
 0x214   :  { %v302_v9 = vpop.permute.xlu0 %301  ;;  %v214_v53 = vadd.f32 %v213_v39, %v212_v28  ;;  %v354_v54 = vrot.slane %v353_v42, 4  ;;  %v935_v57 = vadd.f32 %v203_v38, %v202_v22  ;;  %v323_v58 = vrot.slane %v322_v41, 1 }
 0x215   :  { %v219_v33 = vsel %vm197_vm2, %v192_v19, 0.0  ;;  %v316_v34 = vmul.f32 %v302_v9, %v127_v23  ;;  %v209_v2 = vadd.f32 %v208_v46, %v207_v31  ;;  %v349_v3 = vrot.slane %v348_v49, 2 }
 0x216   :  { %v167_v7 = vpop.permute.xlu1 %166  ;;  %v220_v43 = vrot.slane %v219_v33, 4  ;;  %v215_v6 = vrot.slane %v214_v53, 2  ;;  %v938_v11 = vadd.f32 %v323_v58, %v322_v41 }
 0x217   :  { %v193_v21 = vmul.f32 %v167_v7, %v125_v5  ;;  %v360_v50 = vsel %vm197_vm2, %v316_v34, 0.0  ;;  %v355_v7 = vadd.f32 %v354_v54, %v353_v42  ;;  %v210_v20 = vrot.slane %v209_v2, 1 }
 0x218   :  { %v309_v25 = vpop.permute.xlu0 %308  ;;  %v221_v59 = vadd.f32 %v220_v43, %v219_v33  ;;  %v361_v62 = vrot.slane %v360_v50, 4  ;;  %v350_v29 = vadd.f32 %v349_v3, %v348_v49 }
 0x219   :  { %v226_v35 = vsel %vm197_vm2, %v193_v21, 0.0  ;;  %v317_v36 = vmul.f32 %v309_v25, %v923_v24  ;;  %v216_v25 = vadd.f32 %v215_v6, %v214_v53  ;;  %v211_v49 = vadd.f32 %v210_v20, %v209_v2 }
 0x21a   :  { %v174_v16 = vpop.permute.xlu1 %173  ;;  %v227_v47 = vrot.slane %v226_v35, 4  ;;  %v222_v13 = vrot.slane %v221_v59, 2  ;;  %v362_v17 = vadd.f32 %v361_v62, %v360_v50 }
 0x21b   :  { %v194_v26 = vmul.f32 %v174_v16, %v126_v18  ;;  %v367_v51 = vsel %vm197_vm2, %v317_v36, 0.0  ;;  %v217_v41 = vrot.slane %v216_v25, 1 }
 0x21c   :  { %v228_v0 = vadd.f32 %v227_v47, %v226_v35  ;;  %v363_v34 = vrot.slane %v362_v17, 2 }
 0x21d   :  { %v233_v40 = vsel %vm197_vm2, %v194_v26, 0.0  ;;  %v356_v26 = vrot.slane %v355_v7, 2  ;;  %v218_v58 = vadd.f32 %v217_v41, %v216_v25 }
 0x21e   :  { %v181_v30 = vpop.permute.xlu1 %180  ;;  %v234_v52 = vrot.slane %v233_v40, 4  ;;  %v229_v18 = vrot.slane %v228_v0, 2  ;;  %v364_v50 = vadd.f32 %v363_v34, %v362_v17 }
 0x21f   :  { %v195_v37 = vmul.f32 %v181_v30, %v127_v23  ;;  %v223_v30 = vadd.f32 %v222_v13, %v221_v59  ;;  %v357_v42 = vadd.f32 %v356_v26, %v355_v7 }
 0x220   :  { %v235_v4 = vadd.f32 %v234_v52, %v233_v40  ;;  %v230_v35 = vadd.f32 %v229_v18, %v228_v0  ;;  %v365_v3 = vrot.slane %v364_v50, 1 }
 0x221   :  { %v240_v44 = vsel %vm197_vm2, %v195_v37, 0.0 }
 0x222   :  { %v267_v45 = vpop.permute.xlu1 %266  ;;  %v241_v55 = vrot.slane %v240_v44, 4  ;;  %v236_v21 = vrot.slane %v235_v4, 2 }
 0x223   :  { %v311_v48 = vmul.f32 %v267_v45, %v122_v63  ;;  %v368_v63 = vrot.slane %v367_v51, 4  ;;  %v224_v45 = vrot.slane %v223_v30, 1 }
 0x224   :  { %v242_v9 = vadd.f32 %v241_v55, %v240_v44  ;;  %v237_v37 = vadd.f32 %v236_v21, %v235_v4 }
 0x225   :  { %v325_v56 = vsel %vm197_vm2, %v311_v48, 0.0  ;;  %v369_v19 = vadd.f32 %v368_v63, %v367_v51  ;;  %v231_v51 = vrot.slane %v230_v35, 1  ;;  %v225_v62 = vadd.f32 %v224_v45, %v223_v30 }
 0x226   :  { %v326_v60 = vrot.slane %v325_v56, 4  ;;  %v274_v61 = vpop.permute.xlu1 %273  ;;  %v243_v27 = vrot.slane %v242_v9, 2  ;;  %v238_v52 = vrot.slane %v237_v37, 1 }
 0x227   :  { %v312_v1 = vmul.f32 %v274_v61, %v123_v8  ;;  %v358_v61 = vrot.slane %v357_v42, 1  ;;  %v232_v2 = vadd.f32 %v231_v51, %v230_v35 }
 0x228   :  { %v327_v5 = vadd.f32 %v326_v60, %v325_v56  ;;  %v244_v43 = vadd.f32 %v243_v27, %v242_v9  ;;  %v351_v56 = vrot.slane %v350_v29, 1 }
 0x229   :  { %v332_v10 = vsel %vm197_vm2, %v312_v1, 0.0  ;;  %v500_v1 = vsel %vm406_vm3, %v211_v49, %v935_v57 }
 0x22a   :  { %v328_v14 = vrot.slane %v327_v5, 2  ;;  %v333_v15 = vrot.slane %v332_v10, 4  ;;  %v281_v16 = vpop.permute.xlu1 %280  ;;  %v245_v59 = vrot.slane %v244_v43, 1  ;;  %v501_v13 = vsel %vm408_vm4, %v218_v58, %v500_v1 }
 0x22b   :  { %v313_v8 = vmul.f32 %v281_v16, %v919_v12  ;;  %v370_v12 = vrot.slane %v369_v19, 2  ;;  %v359_v16 = vadd.f32 %v358_v61, %v357_v42  ;;  %v502_v17 = vsel %vm410_vm5, %v225_v62, %v501_v13 }
 0x22c   :  { %v329_v22 = vadd.f32 %v328_v14, %v327_v5  ;;  %v334_v23 = vadd.f32 %v333_v15, %v332_v10  ;;  %v239_v5 = vadd.f32 %v238_v52, %v237_v37  ;;  %v352_v10 = vadd.f32 %v351_v56, %v350_v29 }
 0x22d   :  { %v339_v28 = vsel %vm197_vm2, %v313_v8, 0.0  ;;  %v246_v14 = vadd.f32 %v245_v59, %v244_v43 }
 0x22e   :  { %v335_v31 = vrot.slane %v334_v23, 2  ;;  %v340_v32 = vrot.slane %v339_v28, 4  ;;  %v188_v33 = vpop.permute.xlu1 %187  ;;  %v330_v38 = vrot.slane %v329_v22, 1 }
 0x22f   :  { %v196_v36 = vmul.f32 %v188_v33, %v923_v24  ;;  %v371_v24 = vadd.f32 %v370_v12, %v369_v19  ;;  %v366_v19 = vadd.f32 %v365_v3, %v364_v50 }
 0x230   :  { %v336_v39 = vadd.f32 %v335_v31, %v334_v23  ;;  %v341_v40 = vadd.f32 %v340_v32, %v339_v28  ;;  %v331_v53 = vadd.f32 %v330_v38, %v329_v22 }
 0x231   :  { %v247_v44 = vsel %vm197_vm2, %v196_v36, 0.0  ;;  %v372_v4 = vrot.slane %v371_v24, 1 }
 0x232   :  { %v337_v46 = vrot.slane %v336_v39, 1  ;;  %v342_v47 = vrot.slane %v341_v40, 2  ;;  %v248_v48 = vrot.slane %v247_v44, 4  ;;  %v407_v6 = vsel %vm406_vm3, %v331_v53, %v938_v11 }
 0x233   :  { %v503_v11 = vsel %vm412_vm6, %v232_v2, %v502_v17  ;;  %v373_v20 = vadd.f32 %v372_v4, %v371_v24 }
 0x234   :  { %v343_v54 = vadd.f32 %v342_v47, %v341_v40  ;;  %v249_v55 = vadd.f32 %v248_v48, %v247_v44  ;;  %v338_v60 = vadd.f32 %v337_v46, %v336_v39  ;;  %v504_v23 = vsel %vm414_vm7, %v239_v5, %v503_v11 }
 0x235   :  { %v505_v26 = vsel %vm416_vm8, %v246_v14, %v504_v23 }
 0x236   :  { %v344_v0 = vrot.slane %v343_v54, 1  ;;  %v250_v63 = vrot.slane %v249_v55, 2  ;;  %v409_v15 = vsel %vm408_vm4, %v338_v60, %v407_v6 }
 0x238   :  { %v345_v7 = vadd.f32 %v344_v0, %v343_v54  ;;  %v251_v9 = vadd.f32 %v250_v63, %v249_v55 }
 0x23a   :  { %v411_v57 = vsel %vm410_vm5, %v345_v7, %v409_v15  ;;  %v252_v18 = vrot.slane %v251_v9, 1 }
 0x23b   :  { %v413_v8 = vsel %vm412_vm6, %v352_v10, %v411_v57 }
 0x23c   :  { %v253_v21 = vadd.f32 %v252_v18, %v251_v9  ;;  %v415_v22 = vsel %vm414_vm7, %v359_v16, %v413_v8 }
 0x23d   :  { %v417_v25 = vsel %vm416_vm8, %v366_v19, %v415_v22 }
 0x23e   :  { %v419_v27 = vsel %vm418_vm9, %v373_v20, %v417_v25  ;;  %v506_v28 = vsel %vm418_vm9, %v253_v21, %v505_v26 }
 0x23f   :  { %633 = vmatmul.mubr.msk.f32.vlgmr.msra.gmra.mxu0 %vm197_vm2, %v419_v27  ;;  %644 = vmatmul.mubr.msk.f32.vlgmr.msra.gmra.mxu1 %vm197_vm2, %v506_v28 }
 0x240   :  { %793 = shalt.err (!%p790_p6)
}
 0x241   :  { %589 = dma.vmem_to_hbm [thread:$0]  %s587_s5, 128, %s973_s6, [#allocation4]  }
 0x242   :  { %s845_s9 = smov [#allocation14]  }
 0x243   :  { %s596_s10 = sshll.u32 %s845_s9, 4  ;;  %s597_s10 = int_to_ptr.vmem [resolvable:$true] %s596_s10 }
 0x244   :  { %s802_s11 = scalar_lea.vmem %s597_s10, 128  ;;  %p807_p8 = scmp.lt.s32.totalorder %s597_s10, %s597_s10 }
 0x245   :  { %p803_p7 = scmp.ne.s32.totalorder %s597_s10, %s802_s11  ;;  %p808_p9 = scmp.lt.s32.totalorder %s802_s11, %s802_s11 }
 0x247   :  { %p809_p10 = por %p808_p9, %p807_p8 }
 0x249   :  { %p810_p11 = pnand %p809_p10, %p803_p7 }
 0x2ff   :  { %v488_v29 = vpop.f32.mrf.mxu0  ;;  %v575_v30 = vpop.f32.mrf.mxu1 }
 0x300   :  { %v576_v31 = vadd.f32 %v575_v30, %v488_v29 }
 0x301   :  { %v634_v32 = vpop.f32.mrf.mxu0  ;;  %v645_v33 = vpop.f32.mrf.mxu1 }
 0x302   :  { %579 = vst.msk [vmem:[#allocation14] sm:$0xff] %vm197_vm2, %v576_v31 }
 0x303   :  { %813 = shalt.err (!%p810_p11)
}
 0x304   :  { %599 = dma.vmem_to_hbm [thread:$0]  %s597_s10, 128, %s974_s7, [#allocation15]  }
 0x305   :  { %830 = dma.done.wait [#allocation4], 128  }
 0x306   :  { %831 = vsyncadd [#allocation4], 4294967168 }
 0x307   :  { %832 = dma.done.wait [#allocation15], 128  }
 0x308   :  { %833 = vsyncadd [#allocation15], 4294967168 }
 0x309   :  { %606 = vsyncpa [#allocation3], 1 }
 0x30a   :  { %607 = vsyncpa [#allocation6], 1 }
 0x30b   :  { %608 = vsyncpa [#allocation9], 1 }
 0x30c   :  { %609 = vsyncpa [#allocation12], 1 }
 0x30d   :  { %610 = vsyncpa [#allocation4], 1 }
 0x30e   :  { %611 = vsyncpa [#allocation15], 1 }

</bundles_post_ra>
